<compile_context>
chip_gen: v7x
topology: tpu7x:2x2x1
jax: 0.10.0
libtpu: 0.0.40
codegen_flags: <defaults>
</compile_context>

<pallas_src>
import functools

import jax
import jax.numpy as jnp
from jax.experimental import pallas as pl
from jax.experimental.pallas import tpu as pltpu


def _round_up(x, m):
    return ((x + m - 1) // m) * m


def _pad_to(x, target_shape):
    pads = tuple((0, t - s) for s, t in zip(x.shape, target_shape))
    if all(p[1] == 0 for p in pads):
        return x
    return jnp.pad(x, pads)


def _largest_tile(dim, prefs=(512, 256, 128)):
    for t in prefs:
        if dim % t == 0:
            return t
    return 128


def _vmem_limit_bytes():
    """Generation-aware scoped VMEM limit: ~75% of physical per-core VMEM."""
    cap = 64 * 1024 * 1024  # conservative fallback (v7x physical size)
    try:
        info = pltpu.get_tpu_info()
        cap = getattr(info, "vmem_capacity_bytes", cap) or cap
    except Exception:
        pass
    return int(cap * 3 // 4)


# ---------------- Phase 1: h = feat @ W  (batch folded into M) -----------------
def _proj_kernel_single_k(x_ref, w_ref, h_ref, *, compute_dtype):
    # Full-K block: no reduction grid axis, no accumulator scratch.
    h_ref[...] = jnp.dot(
        x_ref[...].astype(compute_dtype),
        w_ref[...].astype(compute_dtype),
        preferred_element_type=jnp.float32,
    ).astype(h_ref.dtype)


def _proj_kernel_tiled_k(x_ref, w_ref, h_ref, acc_ref, *, compute_dtype):
    @pl.when(pl.program_id(2) == 0)
    def _():
        acc_ref[...] = jnp.zeros_like(acc_ref)

    acc_ref[...] += jnp.dot(
        x_ref[...].astype(compute_dtype),
        w_ref[...].astype(compute_dtype),
        preferred_element_type=jnp.float32,
    )

    @pl.when(pl.program_id(2) == pl.num_programs(2) - 1)
    def _():
        h_ref[...] = acc_ref[...].astype(h_ref.dtype)


# ------------- Phase 2: out = PReLU(adj @ h + bias), tiled over nodes ----------
def _agg_kernel(adj_ref, h_ref, b_ref, alpha_ref, out_ref, acc_ref, *,
                compute_dtype, h_resident, tkn):
    k = pl.program_id(3)

    @pl.when(k == 0)
    def _():
        acc_ref[...] = jnp.zeros_like(acc_ref)

    a_tile = adj_ref[0].astype(compute_dtype)  # in-kernel cast: adj read once from HBM
    if h_resident:
        # h[b] (or its feature tile) is fully VMEM-resident; k only strides adj.
        row0 = pl.multiple_of(k * tkn, tkn)
        h_tile = h_ref[0, pl.ds(row0, tkn), :]
    else:
        h_tile = h_ref[0]
    acc_ref[...] += jnp.dot(a_tile, h_tile.astype(compute_dtype),
                            preferred_element_type=jnp.float32)

    @pl.when(k == pl.num_programs(3) - 1)
    def _():
        out = acc_ref[...] + b_ref[...]          # f32 epilogue on the VPU
        alpha = alpha_ref[0, 0]
        out_ref[0] = jnp.where(out > 0.0, out, alpha * out).astype(out_ref.dtype)


def gcn_layer(feat, adj, weight, bias, alpha, *, compute_dtype=jnp.bfloat16):
    """GCNLayer forward: PReLU(adj @ (feat @ W) + bias).

    feat:   [B, N, F_in]
    adj:    [B, N, N]
    weight: [F_in, F_out] (pre-transposed vs torch's [out, in])
    bias:   [F_out]
    alpha:  scalar PReLU negative slope.

    compute_dtype is the MXU-input dtype (default bf16 on all TPU generations;
    the aggregation phase is HBM-bound and the MXUs are bf16-native). Casting
    is done inside the kernels, accumulation + bias/PReLU epilogue are f32, and
    the h intermediate is kept in f32 HBM. Pass compute_dtype=jnp.float32 for
    exact f32 parity. Returns [B, N, F_out] in feat.dtype.
    """
    B, N, F_in = feat.shape
    F_out = weight.shape[1]
    out_dtype = feat.dtype

    # Lane-dense / MXU-aligned padded sizes (last dims multiples of 128).
    N_p = _round_up(N, 128)
    F_in_p = _round_up(F_in, 128)
    F_out_p = _round_up(F_out, 128)

    # Pad only if needed. NO wrapper-side dtype cast: adj is the dominant HBM
    # stream (B*N^2) and is read exactly once inside Phase 2.
    feat_p = _pad_to(feat, (B, N_p, F_in_p))
    adj_p = _pad_to(adj, (B, N_p, N_p))
    w_p = _pad_to(weight, (F_in_p, F_out_p))
    bias_p = _pad_to(bias.astype(jnp.float32), (F_out_p,)).reshape(1, F_out_p)
    alpha2d = jnp.asarray(alpha, jnp.float32).reshape(1, 1)

    vmem_limit = _vmem_limit_bytes()
    budget = vmem_limit // 2  # planning headroom for compiler scratch / pipelining

    # ---- Phase 1: batched projection (B*N_p, F_in_p) @ (F_in_p, F_out_p) -> f32 h
    M = B * N_p
    x2d = feat_p.reshape(M, F_in_p)
    tm = _largest_tile(M)
    tn = _largest_tile(F_out_p)
    # Keep >= 2 parallel steps so v7x's second TensorCore has work.
    if (M // tm) * (F_out_p // tn) < 2 and M // 128 >= 2:
        tm = 256 if (M % 256 == 0 and M // 256 >= 2) else 128

    if F_in_p <= 2048:
        h = pl.pallas_call(
            functools.partial(_proj_kernel_single_k, compute_dtype=compute_dtype),
            out_shape=jax.ShapeDtypeStruct((M, F_out_p), jnp.float32),
            grid_spec=pltpu.PrefetchScalarGridSpec(
                num_scalar_prefetch=0,
                grid=(M // tm, F_out_p // tn),
                in_specs=[
                    pl.BlockSpec((tm, F_in_p), lambda i, j: (i, 0)),
                    pl.BlockSpec((F_in_p, tn), lambda i, j: (0, j)),
                ],
                out_specs=pl.BlockSpec((tm, tn), lambda i, j: (i, j)),
            ),
            compiler_params=pltpu.CompilerParams(
                dimension_semantics=("parallel", "parallel"),
                vmem_limit_bytes=vmem_limit,
            ),
        )(x2d, w_p)
    else:
        tk = _largest_tile(F_in_p)
        h = pl.pallas_call(
            functools.partial(_proj_kernel_tiled_k, compute_dtype=compute_dtype),
            out_shape=jax.ShapeDtypeStruct((M, F_out_p), jnp.float32),
            grid_spec=pltpu.PrefetchScalarGridSpec(
                num_scalar_prefetch=0,
                grid=(M // tm, F_out_p // tn, F_in_p // tk),
                in_specs=[
                    pl.BlockSpec((tm, tk), lambda i, j, k: (i, k)),
                    pl.BlockSpec((tk, tn), lambda i, j, k: (k, j)),
                ],
                out_specs=pl.BlockSpec((tm, tn), lambda i, j, k: (i, j)),
                scratch_shapes=[pltpu.VMEM((tm, tn), jnp.float32)],
            ),
            compiler_params=pltpu.CompilerParams(
                dimension_semantics=("parallel", "parallel", "arbitrary"),
                vmem_limit_bytes=vmem_limit,
            ),
        )(x2d, w_p)
    h3 = h.reshape(B, N_p, F_out_p)

    # ---- Phase 2: out[b] = PReLU(adj[b] @ h[b] + bias) -------------------------
    adj_item = jnp.dtype(adj_p.dtype).itemsize
    out_item = jnp.dtype(out_dtype).itemsize

    tr = _largest_tile(N_p)    # adjacency row tile (output rows), up to 512
    tkn = _largest_tile(N_p)   # reduction tile over source nodes, up to 512

    def p2_bytes(tf, resident):
        h_rows = N_p if resident else tkn
        return (2 * tr * tkn * adj_item      # adj double-buffer
                + 2 * h_rows * tf * 4        # h (f32) double-buffer
                + 2 * tr * tf * out_item     # out double-buffer
                + tr * tf * 4                # f32 accumulator scratch
                + 2 * F_out_p * 4)           # bias (negligible)

    # Feature-dim tile: keep F_out whole when VMEM allows; tile it for wide
    # layers so the kernel still fits v7x's smaller VMEM. Prefer resident h[b].
    tf_cands = [F_out_p] + [t for t in (2048, 1024, 512, 256, 128)
                            if t < F_out_p and F_out_p % t == 0]
    h_resident, tf = True, None
    for cand in tf_cands:
        if p2_bytes(cand, True) <= budget:
            tf = cand
            break
    if tf is None:
        h_resident = False
        for cand in tf_cands:
            if p2_bytes(cand, False) <= budget:
                tf = cand
                break
        if tf is None:
            tf = tf_cands[-1]

    # Keep >= 2 parallel (b, j, i) steps so v7x's second TensorCore has work.
    if B * (F_out_p // tf) * (N_p // tr) < 2 and N_p // 128 >= 2:
        tr = 256 if (N_p % 256 == 0 and N_p // 256 >= 2) else 128

    if h_resident:
        h_spec = pl.BlockSpec((1, N_p, tf), lambda b, j, i, k: (b, 0, j))
    else:
        h_spec = pl.BlockSpec((1, tkn, tf), lambda b, j, i, k: (b, k, j))

    out_p = pl.pallas_call(
        functools.partial(_agg_kernel, compute_dtype=compute_dtype,
                          h_resident=h_resident, tkn=tkn),
        out_shape=jax.ShapeDtypeStruct((B, N_p, F_out_p), out_dtype),
        grid_spec=pltpu.PrefetchScalarGridSpec(
            num_scalar_prefetch=0,
            # Grid order (b, j, i, k): k (reduction) innermost. With a resident
            # h block, its (b, 0, j) index is constant across the whole i sweep,
            # so h[b] is DMA'd once per (b, j) instead of once per row tile;
            # adj streams exactly once; out is written once per (b, i, j).
            grid=(B, F_out_p // tf, N_p // tr, N_p // tkn),
            in_specs=[
                pl.BlockSpec((1, tr, tkn), lambda b, j, i, k: (b, i, k)),
                h_spec,
                pl.BlockSpec((1, tf), lambda b, j, i, k: (0, j)),          # bias, VMEM-resident
                pl.BlockSpec(memory_space=pltpu.MemorySpace.SMEM),         # alpha scalar
            ],
            out_specs=pl.BlockSpec((1, tr, tf), lambda b, j, i, k: (b, i, j)),
            scratch_shapes=[pltpu.VMEM((tr, tf), jnp.float32)],
        ),
        compiler_params=pltpu.CompilerParams(
            dimension_semantics=("parallel", "parallel", "parallel", "arbitrary"),
            vmem_limit_bytes=vmem_limit,
        ),
    )(adj_p, h3, bias_p, alpha2d)

    return out_p[:, :N, :F_out]


def reference(feat, adj, weight, bias, alpha):
    h = jnp.einsum("bnf,fo->bno", feat, weight)
    out = jnp.einsum("bnm,bmo->bno", adj, h) + bias
    return jnp.where(out > 0, out, alpha * out)


if __name__ == "__main__":
    B, N, in_ft, out_ft = 2, 8, 32, 32

    key = jax.random.PRNGKey(0)
    k_feat, k_adj, k_w = jax.random.split(key, 3)

    feat = jax.random.normal(k_feat, (B, N, in_ft), dtype=jnp.float32)
    adj_raw = jax.random.uniform(k_adj, (B, N, N), dtype=jnp.float32)
    # symmetric, row-normalized adjacency (typical GCN input)
    adj = adj_raw + jnp.transpose(adj_raw, (0, 2, 1))
    adj = adj / jnp.sum(adj, axis=-1, keepdims=True)

    # Xavier-uniform init (torch stores [out_ft, in_ft]; kept pre-transposed here).
    limit = jnp.sqrt(6.0 / (in_ft + out_ft))
    weight = jax.random.uniform(k_w, (in_ft, out_ft), dtype=jnp.float32,
                                minval=-limit, maxval=limit)
    bias = jnp.zeros((out_ft,), dtype=jnp.float32)   # bias.data.fill_(0.0)
    alpha = jnp.float32(0.25)                        # nn.PReLU default init

    ref = reference(feat, adj, weight, bias, alpha)

    # Exact-parity f32 path.
    out_f32 = jax.block_until_ready(
        gcn_layer(feat, adj, weight, bias, alpha, compute_dtype=jnp.float32))
    assert out_f32.shape == (B, N, out_ft)
    assert jnp.allclose(out_f32, ref, atol=1e-5, rtol=1e-5)

    # Default bf16-MXU path (f32 accumulation, f32 h in HBM, f32 epilogue).
    out_bf16 = jax.block_until_ready(gcn_layer(feat, adj, weight, bias, alpha))
    assert out_bf16.shape == (B, N, out_ft)
    assert jnp.allclose(out_bf16, ref, atol=5e-2, rtol=5e-2)

    print("KERNEL_OK")
</pallas_src>

<mosaic_0001>
module attributes {stable_mosaic.version = 11 : i64} {
  func.func @_proj_kernel_single_k(%arg0: i32, %arg1: i32, %arg2: memref<128x128xf32, #tpu.memory_space<vmem>>, %arg3: memref<128x128xf32, #tpu.memory_space<vmem>>, %arg4: memref<128x128xf32, #tpu.memory_space<vmem>>) attributes {dimension_semantics = [#tpu.dimension_semantics<parallel>, #tpu.dimension_semantics<parallel>], iteration_bounds = array<i64: 2, 1>, scalar_prefetch = 0 : i64, scratch_operands = 0 : i64, tpu.core_type = #tpu.core_type<tc>, window_params = [{transform_indices = @transform_0, window_bounds = array<i64: 128, 128>}, {transform_indices = @transform_1, window_bounds = array<i64: 128, 128>}, {transform_indices = @transform_2, window_bounds = array<i64: 128, 128>}]} {
    %c0 = arith.constant 0 : index
    %c0_0 = arith.constant 0 : index
    %0 = vector.load %arg2[%c0, %c0_0] : memref<128x128xf32, #tpu.memory_space<vmem>>, vector<128x128xf32>
    %c0_1 = arith.constant 0 : index
    %c0_2 = arith.constant 0 : index
    %1 = vector.load %arg3[%c0_1, %c0_2] : memref<128x128xf32, #tpu.memory_space<vmem>>, vector<128x128xf32>
    %cst = arith.constant dense<0.000000e+00> : vector<128x128xf32>
    %2 = tpu.matmul %0, %1, %cst {dimension_numbers = #tpu.dot_dimension_numbers<[1], [0], [0], [1], [0, 0, 1, 1], [], []>} : vector<128x128xf32>, vector<128x128xf32>, vector<128x128xf32> -> vector<128x128xf32>
    %c0_3 = arith.constant 0 : index
    %c0_4 = arith.constant 0 : index
    %3 = vector.load %arg4[%c0_3, %c0_4] : memref<128x128xf32, #tpu.memory_space<vmem>>, vector<128x128xf32>
    tpu.vector_store %arg4[%c0_3, %c0_4], %2 {strides = array<i32>} : memref<128x128xf32, #tpu.memory_space<vmem>>, vector<128x128xf32>,
    return
  }
  func.func @transform_0(%arg0: i32, %arg1: i32) -> (i32, i32) {
    %c0_i32 = arith.constant 0 : i32
    %c0_i32_0 = arith.constant 0 : i32
    return %arg0, %c0_i32 : i32, i32
  }
  func.func @transform_1(%arg0: i32, %arg1: i32) -> (i32, i32) {
    %c0_i32 = arith.constant 0 : i32
    %c0_i32_0 = arith.constant 0 : i32
    return %c0_i32, %arg1 : i32, i32
  }
  func.func @transform_2(%arg0: i32, %arg1: i32) -> (i32, i32) {
    %c0_i32 = arith.constant 0 : i32
    return %arg0, %arg1 : i32, i32
  }
}

</mosaic_0001>

<bundles_post_ra>
// kernel: tpu_custom_call.1
= control target key start
LH: loop header
LB: loop body
LE: loop exit
PB: predicated region body
PF: predicated region fallthrough
CT: control target
= control target key end

     0   :  { %7 = vsyncpa [#allocation3], 0  ;;  %s1169_s0 = inlined_call_operand.hbm [shape: f32[256,128], index: 0, kind: input, shape index: {}]   ;;  %s1170_s1 = inlined_call_operand.hbm [shape: f32[128,128], index: 1, kind: input, shape index: {}]   ;;  %s1171_s2 = inlined_call_operand.hbm [shape: f32[256,128], index: 2, kind: output, shape index: {}]  }
   0x1   :  { %9 = vsyncpa [#allocation3 + $0x1], 0 }
   0x2   :  { %10 = vsyncpa [#allocation6], 0 }
   0x3   :  { %11 = vsyncpa [#allocation4], 0 }
   0x4   :  { %13 = vsyncpa [#allocation4 + $0x1], 0  ;;  %s903_s9 = smov 0   ;;  %s905_s10 = smov 0  }
   0x5   :  { %s907_s11 = smov 0   ;;  %s909_s12 = smov 0  }
   0x6   :  { %s911_s13 = smov 0   ;;  %s913_s14 = smov 0  }
   0x7 LB: > { %s503_s15 = sadd.s32 4294967295, %s879_s14   ;;  %s504_s16 = sadd.s32 4294967294, %s879_s14   ;;  %s879_s14 = sphi %s913_s14, %s19_s14   ;;  %s875_s13 = sphi %s911_s13, %s1195_s13   ;;  %s871_s12 = sphi %s909_s12, %s1194_s12   ;;  %s867_s11 = sphi %s907_s11, %s1193_s11   ;;  %s863_s10 = sphi %s905_s10, %s1192_s10   ;;  %s859_s9 = sphi %s903_s9, %s1191_s9  }
   0x8   : > { %p51_p0 = scmp.ne.s32.totalorder %s863_s10, %s859_s9  ;;  %p937_p1 = scmp.eq.s32.totalorder %s503_s15, 0 }
   0x9   : > { %p941_p2 = scmp.eq.s32.totalorder %s503_s15, 1  ;;  %p109_p3 = scmp.eq.s32.totalorder %s504_s16, 1 }
   0xa   : > { %s1176_s17 = scalar_select %p937_p1, 1, 0 }
   0xb   : > { %s1177_s18 = scalar_select %p941_p2, 1, 0 }
   0xc   : > { %p947_p4 = por %p937_p1, %p51_p0  ;;  %p505_p5 = scmp.ge.s32.totalorder %s879_s14, 1 }
   0xd   : > { %p952_p6 = por %p109_p3, %p51_p0  ;;  %p116_p7 = scmp.lt.s32.totalorder %s879_s14, 3 }
   0xe   : > { %s1178_s19 = scalar_select %p947_p4, 1, 0 }
   0xf   : > { %s1179_s20 = scalar_select %p952_p6, 1, 0 }
  0x10   : > { %p957_p8 = pnand %p505_p5, %p116_p7  ;;  %s881_s22 = smov [#allocation5]  }
  0x11   : > { %s130_s23 = sshll.u32 %s881_s22, 4  ;;  %s31_s25 = sadd.s32 1, %s875_s13  ;;  %s131_s23 = int_to_ptr.vmem [resolvable:$true] %s130_s23 }
  0x12   : > { %s1180_s21 = scalar_select %p957_p8, 1, 0 }
  0x13   : > { %p666_p9 = pneg %p957_p8  ;;  %s735_s28 = scalar_lea.hbm %s1170_s1, 2048 }
  0x14   : > { %p736_p12 = scmp.ne.s32.totalorder %s1170_s1, %s735_s28  ;;  %p742_p5 = scmp.lt.u32.totalorder %s735_s28, %s1170_s1 }
  0x15   : > { %p966_p11 = pnand %p666_p9, %p937_p1 }
  0x17   : > { %p737_p13 = pneg %p966_p11 }
  0x19   : > { %p738_p0 = pnand %p737_p13, %p736_p12 }
  0x1b   : > { %p739_p3 = pneg %p738_p0 }
  0x1d   : > { %p744_p7 = pnand %p742_p5, %p739_p3 }
  0x1f   : > { %747 = shalt.err (!%p744_p7)
}
  0x20   : > { %s748_s5 = scalar_lea.vmem %s131_s23, 2048  ;;  %p756_p1 = scmp.lt.s32.totalorder %s131_s23, %s131_s23 }
  0x21   : > { %p749_p9 = scmp.ne.s32.totalorder %s131_s23, %s748_s5  ;;  %p757_p4 = scmp.lt.s32.totalorder %s748_s5, %s748_s5 }
  0x23   : > { %p751_p10 = pnand %p749_p9, %p737_p13  ;;  %p758_p8 = por %p757_p4, %p756_p1 }
  0x25   : > { %p752_p6 = pneg %p751_p10 }
  0x27   : > { %p759_p2 = pnand %p758_p8, %p752_p6 }
  0x29   : > { %762 = shalt.err (!%p759_p2)
}
  0x2a   : > { %s882_s6 = smov 128   ;;  %s883_s7 = smov 8  }
  0x2b   : > { %669 = dma.hbm_to_vmem [thread:$0]  (!%p966_p11), %s1170_s1, 2048, %s131_s23, [#allocation6], %s882_s6, %s882_s6, %s883_s7  }
  0x2c   : > { %p33_p1 = scmp.ge.s32.totalorder %s31_s25, 2  ;;  %s38_s16 = sadd.s32 1, %s867_s11 }
  0x2d   : > { %p45_p2 = scmp.ne.s32.totalorder %s867_s11, %s863_s10  ;;  %p46_p4 = scmp.eq.s32.totalorder %s879_s14, 0 }
  0x2e   : > { %s1197_s25 = smov (%p33_p1, %s31_s25), 0  ;;  %p1183_p8 = scmp.ne.s32.totalorder %s1177_s18, 0 }
  0x2f   : > { %p996_p6 = por %p46_p4, %p45_p2  ;;  %s35_s26 = ssub.s32 %s875_s13, %s1197_s25 }
  0x30   : > { %p1002_p10 = por %p1183_p8, %p45_p2  ;;  %p679_p12 = scmp.lt.s32.totalorder %s879_s14, 2 }
  0x31   : > { %p36_p11 = scmp.eq.s32.totalorder %s35_s26, 0  ;;  %s144_s23 = sand.u32 1, %s867_s11  }
  0x32   : > { %s508_s27 = sshll.u32 %s144_s23, 7  ;;  %s520_s29 = sshll.u32 %s875_s13, 11 }
  0x33   : > { %s1011_s28 = scalar_select %p36_p11, %s867_s11, %s38_s16  }
  0x34   : > { %s1017_s4 = scalar_lea.hbm %s1169_s0, %s520_s29  ;;  %s148_s18 = scalar_lea.vmem [#allocation2], %s508_s27 }
  0x35   : > { %s155_s5 = sshll.u32 %s148_s18, 4  ;;  %p1023_p13 = pnand %p679_p12, %p996_p6  ;;  %s1019_s5 = int_to_ptr.vmem [resolvable:$true] %s155_s5 }
  0x36   : > { %s1027_s15 = scalar_lea.sflag [#allocation3], %s144_s23  ;;  %s763_s16 = scalar_lea.hbm %s1017_s4, 2048 }
  0x37   : > { %p764_p0 = scmp.ne.s32.totalorder %s1017_s4, %s763_s16  ;;  %p765_p3 = pneg %p1023_p13 }
  0x38   : > { %s768_s22 = scalar_lea.hbm %s1169_s0, 4096  ;;  %p769_p9 = scmp.lt.u32.totalorder %s1017_s4, %s1169_s0 }
  0x39   : > { %p766_p5 = pnand %p765_p3, %p764_p0  ;;  %p770_p1 = scmp.lt.u32.totalorder %s768_s22, %s763_s16 }
  0x3a   : > { %p772_p4 = scmp.lt.u32.totalorder %s763_s16, %s1017_s4 }
  0x3b   : > { %p767_p7 = pneg %p766_p5  ;;  %p771_p2 = por %p770_p1, %p769_p9 }
  0x3d   : > { %p773_p6 = por %p772_p4, %p771_p2 }
  0x3f   : > { %p774_p8 = pnand %p773_p6, %p767_p7 }
  0x41   : > { %777 = shalt.err (!%p774_p8)
}
  0x42   : > { %s778_s23 = scalar_lea.vmem %s1019_s5, 2048  ;;  %s884_s3 = smov [#allocation2]  }
  0x43   : > { %p779_p12 = scmp.ne.s32.totalorder %s1019_s5, %s778_s23  ;;  %s783_s18 = sshll.u32 %s884_s3, 4  ;;  %s784_s18 = int_to_ptr.vmem [resolvable:$false] %s783_s18 }
  0x44   : > { %s785_s26 = scalar_lea.vmem %s784_s18, 4096  ;;  %p786_p5 = scmp.lt.s32.totalorder %s1019_s5, %s784_s18 }
  0x45   : > { %p781_p11 = pnand %p779_p12, %p765_p3  ;;  %p787_p9 = scmp.lt.s32.totalorder %s785_s26, %s778_s23 }
  0x47   : > { %p782_p0 = pneg %p781_p11  ;;  %p788_p1 = por %p787_p9, %p786_p5 }
  0x49   : > { %p789_p2 = pnand %p788_p1, %p782_p0 }
  0x4b   : > { %792 = shalt.err (!%p789_p2)
}
  0x4c   : > { %673 = dma.hbm_to_vmem [thread:$0]  (!%p1023_p13), %s1017_s4, 2048, %s1019_s5, %s1027_s15, %s882_s6, %s882_s6, %s883_s7  }
  0x4d   : > { %p1186_p3 = scmp.ne.s32.totalorder %s1180_s21, 0 }
  0x4e   : > { %s1061_s16 = sand.u32 (!%p1186_p3), 1, %s863_s10   ;;  %p1187_p7 = scmp.ne.s32.totalorder (!%p1186_p3), %s1178_s19, 0 }
  0x4f   : > { %167 = sbr.rel (%p1186_p3) target bundleno = 365 (0x16d), region = 28  ;;  %s512_s27 = sshll.u32 (!%p1186_p3), %s1061_s16, 7 }
  0x50   : > { %s170_s22 = scalar_lea.sflag (!%p1186_p3), [#allocation3], %s1061_s16  ;;  %s1067_s8 = scalar_lea.vmem (!%p1186_p3), [#allocation2], %s512_s27 }
  0x56   : > { %846 = dma.done.wait (%p1187_p7), %s170_s22, 2048  }
  0x57   : > { %848 = vsyncadd (%p1187_p7), %s170_s22, 4294965248  ;;  %p1188_p13 = scmp.ne.s32.totalorder %s1176_s17, 0 }
  0x59   : > { %850 = dma.done.wait (%p1188_p13), [#allocation6], 2048  }
  0x5a   : > { %852 = vsyncadd (%p1188_p13), [#allocation6], 4294965248  ;;  %v216_v0 = vld [vmem:[#allocation5] sm:$0xff]  ;;  %v217_v1 = vld [vmem:[#allocation5 + $0x8] sm:$0xff]  ;;  %s1095_s17 = scalar_lea.vmem [#allocation7], %s512_s27  ;;  %s521_s19 = sshll.u32 %s871_s12, 11 }
  0x5b   : > { %v218_v2 = vld [vmem:[#allocation5 + $0x10] sm:$0xff]  ;;  %v610_v3 = vpack.c.bf16 %v217_v1, %v216_v0  ;;  %v219_v4 = vld [vmem:[#allocation5 + $0x18] sm:$0xff]  ;;  %v220_v6 = vld [vmem:[#allocation5 + $0x20] sm:$0xff]  ;;  %s408_s21 = sshll.u32 %s1095_s17, 4  ;;  %s1114_s4 = scalar_lea.hbm %s1171_s2, %s521_s19  ;;  %s1116_s21 = int_to_ptr.vmem [resolvable:$true] %s408_s21 }
  0x5c   : > { %v614_v5 = vpack.c.bf16 %v219_v4, %v218_v2  ;;  %v221_v7 = vld [vmem:[#allocation5 + $0x28] sm:$0xff]  ;;  %v200_v9 = vld [vmem:[%s1067_s8] sm:$0xff]  ;;  %v222_v11 = vld [vmem:[#allocation5 + $0x30] sm:$0xff]  ;;  %s394_s12 = scalar_lea.sflag [#allocation4], %s1061_s16  ;;  %s793_s5 = scalar_lea.vmem %s1116_s21, 2048 }
  0x5d   : > { %611 = vmatprep.subr.bf16.mxu0 %v610_v3  ;;  %642 = vmatprep.subr.bf16.mxu1 %v610_v3  ;;  %v618_v8 = vpack.c.bf16 %v221_v7, %v220_v6  ;;  %v208_v10 = vld [vmem:[%s1067_s8 + $0x40] sm:$0xff]  ;;  %v223_v12 = vld [vmem:[#allocation5 + $0x38] sm:$0xff]  ;;  %v225_v15 = vld [vmem:[#allocation5 + $0x48] sm:$0xff]  ;;  %p794_p4 = scmp.ne.s32.totalorder %s1116_s21, %s793_s5  ;;  %s885_s15 = smov [#allocation7]  }
  0x5e   : > { %613 = vmatpush3.bf16.msra.mxu0 %v610_v3  ;;  %650 = vmatpush3.bf16.msra.mxu1 %v610_v3  ;;  %v622_v13 = vpack.c.bf16 %v223_v12, %v222_v11  ;;  %v224_v14 = vld [vmem:[#allocation5 + $0x40] sm:$0xff]  ;;  %v226_v17 = vld [vmem:[#allocation5 + $0x50] sm:$0xff]  ;;  %v227_v18 = vld [vmem:[#allocation5 + $0x58] sm:$0xff]  ;;  %s797_s29 = sshll.u32 %s885_s15, 4  ;;  %s798_s29 = int_to_ptr.vmem [resolvable:$false] %s797_s29 }
  0x5f   : > { %615 = vmatprep.subr.bf16.mxu0 %v614_v5  ;;  %643 = vmatprep.subr.bf16.mxu1 %v614_v5  ;;  %v626_v16 = vpack.c.bf16 %v225_v15, %v224_v14  ;;  %v630_v19 = vpack.c.bf16 %v227_v18, %v226_v17  ;;  %v228_v20 = vld [vmem:[#allocation5 + $0x60] sm:$0xff]  ;;  %v229_v21 = vld [vmem:[#allocation5 + $0x68] sm:$0xff]  ;;  %v230_v23 = vld [vmem:[#allocation5 + $0x70] sm:$0xff]  ;;  %p795_p6 = pnand %p794_p4, %p1002_p10  ;;  %s799_s30 = scalar_lea.vmem %s798_s29, 4096 }
  0x60   : > { %586 = vmatprep.mubr.f32.mxu0 %v200_v9  ;;  %598 = vmatprep.mubr.f32.mxu1 %v208_v10  ;;  %v634_v22 = vpack.c.bf16 %v229_v21, %v228_v20  ;;  %v231_v24 = vld [vmem:[#allocation5 + $0x78] sm:$0xff]  ;;  %v201_v26 = vld [vmem:[%s1067_s8 + $0x8] sm:$0xff]  ;;  %v202_v28 = vld [vmem:[%s1067_s8 + $0x10] sm:$0xff]  ;;  %p800_p12 = scmp.lt.s32.totalorder %s1116_s21, %s798_s29  ;;  %p801_p11 = scmp.lt.s32.totalorder %s799_s30, %s793_s5 }
  0x61   : > { %v638_v25 = vpack.c.bf16 %v231_v24, %v230_v23  ;;  %v209_v27 = vld [vmem:[%s1067_s8 + $0x48] sm:$0xff]  ;;  %v210_v29 = vld [vmem:[%s1067_s8 + $0x50] sm:$0xff]  ;;  %v203_v30 = vld [vmem:[%s1067_s8 + $0x18] sm:$0xff]  ;;  %p796_p8 = pneg %p795_p6 }
  0x62   : > { %617 = vmatpush3.bf16.msra.mxu0 %v614_v5  ;;  %651 = vmatpush3.bf16.msra.mxu1 %v614_v5  ;;  %v211_v31 = vld [vmem:[%s1067_s8 + $0x58] sm:$0xff]  ;;  %v204_v32 = vld [vmem:[%s1067_s8 + $0x20] sm:$0xff]  ;;  %v205_v34 = vld [vmem:[%s1067_s8 + $0x28] sm:$0xff]  ;;  %p802_p0 = por %p801_p11, %p800_p12 }
  0x63   : > { %619 = vmatprep.subr.bf16.mxu0 %v618_v8  ;;  %644 = vmatprep.subr.bf16.mxu1 %v618_v8  ;;  %v212_v33 = vld [vmem:[%s1067_s8 + $0x60] sm:$0xff]  ;;  %v213_v35 = vld [vmem:[%s1067_s8 + $0x68] sm:$0xff]  ;;  %v206_v36 = vld [vmem:[%s1067_s8 + $0x30] sm:$0xff] }
  0x64   : > { %v214_v37 = vld [vmem:[%s1067_s8 + $0x70] sm:$0xff]  ;;  %v207_v38 = vld [vmem:[%s1067_s8 + $0x38] sm:$0xff]  ;;  %p803_p5 = pnand %p802_p0, %p796_p8 }
  0x65   : > { %v215_v39 = vld [vmem:[%s1067_s8 + $0x78] sm:$0xff] }
  0x66   : > { %621 = vmatpush3.bf16.msra.mxu0 %v618_v8  ;;  %652 = vmatpush3.bf16.msra.mxu1 %v618_v8 }
  0x67   : > { %623 = vmatprep.subr.bf16.mxu0 %v622_v13  ;;  %645 = vmatprep.subr.bf16.mxu1 %v622_v13 }
  0x6a   : > { %625 = vmatpush3.bf16.msra.mxu0 %v622_v13  ;;  %653 = vmatpush3.bf16.msra.mxu1 %v622_v13 }
  0x6b   : > { %627 = vmatprep.subr.bf16.mxu0 %v626_v16  ;;  %646 = vmatprep.subr.bf16.mxu1 %v626_v16 }
  0x6e   : > { %629 = vmatpush3.bf16.msra.mxu0 %v626_v16  ;;  %654 = vmatpush3.bf16.msra.mxu1 %v626_v16 }
  0x6f   : > { %631 = vmatprep.subr.bf16.mxu0 %v630_v19  ;;  %647 = vmatprep.subr.bf16.mxu1 %v630_v19 }
  0x72   : > { %633 = vmatpush3.bf16.msra.mxu0 %v630_v19  ;;  %655 = vmatpush3.bf16.msra.mxu1 %v630_v19 }
  0x73   : > { %635 = vmatprep.subr.bf16.mxu0 %v634_v22  ;;  %648 = vmatprep.subr.bf16.mxu1 %v634_v22 }
  0x76   : > { %637 = vmatpush3.bf16.msra.mxu0 %v634_v22  ;;  %656 = vmatpush3.bf16.msra.mxu1 %v634_v22 }
  0x77   : > { %639 = vmatprep.subr.bf16.mxu0 %v638_v25  ;;  %649 = vmatprep.subr.bf16.mxu1 %v638_v25 }
  0x7a   : > { %641 = vmatpush3.bf16.msra.mxu0 %v638_v25  ;;  %657 = vmatpush3.bf16.msra.mxu1 %v638_v25 }
  0x7d   : > { %587 = vmatmul.mubr.f32.vlgmr.msra.gmra.mrb[0].mxu0 %v201_v26  ;;  %599 = vmatmul.mubr.f32.vlgmr.msra.gmra.mrb[0].mxu1 %v209_v27 }
  0x7e   : > { %589 = vmatprep.mubr.f32.mxu0 %v202_v28  ;;  %601 = vmatprep.mubr.f32.mxu1 %v210_v29 }
  0x81   : > { %590 = vmatmul.mubr.f32.gmra.mrb[2].mxu0 %v203_v30  ;;  %602 = vmatmul.mubr.f32.gmra.mrb[2].mxu1 %v211_v31 }
  0x82   : > { %592 = vmatprep.mubr.f32.mxu0 %v204_v32  ;;  %604 = vmatprep.mubr.f32.mxu1 %v212_v33 }
  0x85   : > { %593 = vmatmul.mubr.f32.gmra.mrb[4].mxu0 %v205_v34  ;;  %605 = vmatmul.mubr.f32.gmra.mrb[4].mxu1 %v213_v35 }
  0x86   : > { %595 = vmatprep.mubr.f32.mxu0 %v206_v36  ;;  %607 = vmatprep.mubr.f32.mxu1 %v214_v37 }
  0x89   : > { %596 = vmatmul.mubr.f32.gmra.mrb[6].mxu0 %v207_v38  ;;  %608 = vmatmul.mubr.f32.gmra.mrb[6].mxu1 %v215_v39 }
 0x150   : > { %v588_v40 = vpop.f32.mrb[0].mxu0  ;;  %v600_v41 = vpop.f32.mrb[0].mxu1 }
 0x151   : > { %378 = vst [vmem:[%s1095_s17 + $0x8] sm:$0xff] %v588_v40  ;;  %386 = vst [vmem:[%s1095_s17 + $0x48] sm:$0xff] %v600_v41  ;;  %v298_v42 = vpop.f32.mrb[1].mxu0  ;;  %v338_v43 = vpop.f32.mrb[1].mxu1 }
 0x152   : > { %377 = vst [vmem:[%s1095_s17] sm:$0xff] %v298_v42  ;;  %385 = vst [vmem:[%s1095_s17 + $0x40] sm:$0xff] %v338_v43 }
 0x154   : > { %v591_v44 = vpop.f32.mrb[2].mxu0  ;;  %v603_v45 = vpop.f32.mrb[2].mxu1 }
 0x155   : > { %380 = vst [vmem:[%s1095_s17 + $0x18] sm:$0xff] %v591_v44  ;;  %388 = vst [vmem:[%s1095_s17 + $0x58] sm:$0xff] %v603_v45  ;;  %v308_v46 = vpop.f32.mrb[3].mxu0  ;;  %v348_v47 = vpop.f32.mrb[3].mxu1 }
 0x156   : > { %379 = vst [vmem:[%s1095_s17 + $0x10] sm:$0xff] %v308_v46  ;;  %387 = vst [vmem:[%s1095_s17 + $0x50] sm:$0xff] %v348_v47 }
 0x158   : > { %v594_v48 = vpop.f32.mrb[4].mxu0  ;;  %v606_v49 = vpop.f32.mrb[4].mxu1 }
 0x159   : > { %382 = vst [vmem:[%s1095_s17 + $0x28] sm:$0xff] %v594_v48  ;;  %390 = vst [vmem:[%s1095_s17 + $0x68] sm:$0xff] %v606_v49  ;;  %v318_v50 = vpop.f32.mrb[5].mxu0  ;;  %v358_v51 = vpop.f32.mrb[5].mxu1 }
 0x15a   : > { %381 = vst [vmem:[%s1095_s17 + $0x20] sm:$0xff] %v318_v50  ;;  %389 = vst [vmem:[%s1095_s17 + $0x60] sm:$0xff] %v358_v51 }
 0x15c   : > { %v597_v52 = vpop.f32.mrb[6].mxu0  ;;  %v609_v53 = vpop.f32.mrb[6].mxu1 }
 0x15d   : > { %384 = vst [vmem:[%s1095_s17 + $0x38] sm:$0xff] %v597_v52  ;;  %392 = vst [vmem:[%s1095_s17 + $0x78] sm:$0xff] %v609_v53  ;;  %v328_v54 = vpop.f32.mrb[7].mxu0  ;;  %v368_v55 = vpop.f32.mrb[7].mxu1 }
 0x15e   : > { %383 = vst [vmem:[%s1095_s17 + $0x30] sm:$0xff] %v328_v54  ;;  %391 = vst [vmem:[%s1095_s17 + $0x70] sm:$0xff] %v368_v55 }
 0x15f   : > { %806 = shalt.err (!%p803_p5)
}
 0x160   : > { %s807_s23 = scalar_lea.hbm %s1114_s4, 2048  ;;  %s811_s26 = scalar_lea.hbm %s1171_s2, 4096 }
 0x161   : > { %p808_p9 = scmp.ne.s32.totalorder %s1114_s4, %s807_s23  ;;  %p812_p3 = scmp.lt.u32.totalorder %s1114_s4, %s1171_s2 }
 0x162   : > { %p813_p7 = scmp.lt.u32.totalorder %s811_s26, %s807_s23  ;;  %p815_p4 = scmp.lt.u32.totalorder %s807_s23, %s1114_s4 }
 0x163   : > { %p809_p1 = pnand %p808_p9, %p1002_p10 }
 0x164   : > { %p814_p13 = por %p813_p7, %p812_p3 }
 0x165   : > { %p810_p2 = pneg %p809_p1 }
 0x166   : > { %p816_p6 = por %p815_p4, %p814_p13 }
 0x168   : > { %p817_p8 = pnand %p816_p6, %p810_p2 }
 0x16a   : > { %820 = shalt.err (!%p817_p8)
}
 0x16b   : > { %s886_s8 = smov 128   ;;  %s887_s17 = smov 8  }
 0x16c   : > { %664 = dma.vmem_to_hbm [thread:$0]  (%p1002_p10), %s1116_s21, 2048, %s1114_s4, %s394_s12, %s886_s8, %s886_s8, %s887_s17  }
 0x16d PF: > { %s423_s19 = sand.u32 1, %s859_s9   ;;  %p1189_p12 = scmp.ne.s32.totalorder %s1179_s20, 0 }
 0x16e   : > { %p1190_p11 = scmp.ge.s32.totalorder %s879_s14, 2  ;;  %s424_s6 = scalar_lea.sflag [#allocation4], %s423_s19 }
 0x170   : > { %p675_p0 = pnand %p1190_p11, %p1189_p12 }
 0x172   : > { %854 = dma.done.wait (!%p675_p0), %s424_s6, 2048  }
 0x173   : > { %856 = vsyncadd (!%p675_p0), %s424_s6, 4294965248  ;;  %s19_s14 = sadd.s32 1, %s879_s14   ;;  %s1191_s9 = smov %s863_s10 }
 0x174   : > { %p16_p5 = scmp.ge.s32.totalorder %s19_s14, 4   ;;  %s1192_s10 = smov %s867_s11 }
 0x175   : > { %s1193_s11 = smov %s1011_s28  ;;  %s1194_s12 = smov %s875_s13 }
 0x176   : > { %s1195_s13 = smov %s1197_s25  ;;  %18 = sbr.rel (!%p16_p5) target bundleno = 7 (0x7), region = 78 }
 0x17d   :  { %429 = vsyncpa [#allocation3], 1 }
 0x17e   :  { %431 = vsyncpa [#allocation3 + $0x1], 1 }
 0x17f   :  { %432 = vsyncpa [#allocation6], 1 }
 0x180   :  { %433 = vsyncpa [#allocation4], 1 }
 0x181   :  { %435 = vsyncpa [#allocation4 + $0x1], 1 }

</bundles_post_ra>
